<compile_context>
chip_gen: v5e
topology: v5e:2x2
jax: 0.10.0
libtpu: 0.0.40
codegen_flags: <defaults>
</compile_context>

<pallas_src>
import math
import numpy as np

import jax
import jax.numpy as jnp
from jax import lax
from jax.experimental import pallas as pl
from jax.experimental.pallas import tpu as pltpu


def _checkerboard(shape):
    idx = np.indices(shape).sum(axis=0)
    return (1 - idx % 2).astype(np.float32)


# ----------------------------------------------------------------------------
# Fused kernel: batched masked bilinear logits + sigmoid attention + diag
# offset + batched 2x2 slogdets + recombination.  `batch_block` examples per
# grid step, flattened to M = batch_block * 4 rows.
# ----------------------------------------------------------------------------
def _make_attn_kernel(M, half_logdet_mult):
    def kernel(x_ref, abig_ref, mask_ref, imask_ref, amask_ref, eye_ref,
               perm_ref, params_ref, out_ref, ld_ref):
        offset = params_ref[0]
        offset2 = params_ref[1]
        offset3 = params_ref[2]
        inv_scale = 1.0 / params_ref[3]

        # grid-invariant operands (constant block index -> VMEM resident)
        mask = mask_ref[...]        # (M, D) pre-tiled checkerboard
        imask = imask_ref[...]      # (M, D) == 1 - mask
        amask = amask_ref[...]      # (M, M) block-diag attention checkerboard
        eye = eye_ref[...]          # (M, M) identity
        perm = perm_ref[...]        # (M, M) block-diag (n <-> n+2) swap perm
        abig = abig_ref[...]        # (D, D) block-diag lift of A

        x = x_ref[...]              # (M, D) un-masked patch vectors
        fm = x * mask               # masked input (the conv input z_m)
        v = x * imask               # attention "values"

        # logits[r, s] = fm[r]^T A_big fm[s]; only the per-example diagonal
        # N x N blocks are kept (selected by amask / eye below).
        y = jnp.dot(fm, abig, preferred_element_type=jnp.float32)          # (M, D)
        logits = lax.dot_general(y, fm, (((1,), (1,)), ((), ())),
                                 preferred_element_type=jnp.float32)       # (M, M)

        # stable sigmoid (tanh -> EUP), reciprocal scale instead of divide
        sig = 0.5 * (jnp.tanh((logits * inv_scale + offset2) * 0.5) + 1.0)
        # block-diag masked attention; +offset*I is exactly the m1/m2 update
        attn = (sig + offset3) * amask + offset * eye                      # (M, M)

        out = jnp.dot(attn, v, preferred_element_type=jnp.float32)         # (M, D)
        out_ref[...] = out * imask + fm

        # ---- batched slogdet of the two interleaved 2x2 sub-matrices ----
        # attn has exactly 2 nonzeros per row (diag + same-parity off-diag):
        rsum = jnp.sum(attn, axis=-1, keepdims=True)                       # (M, 1)
        diag = jnp.sum(attn * eye, axis=-1, keepdims=True)                 # (M, 1)
        offd = rsum - diag                                                 # (M, 1)
        # pair each row with its partner row (n <-> n+2 within each example)
        diag_sw = jnp.dot(perm, diag, preferred_element_type=jnp.float32)  # (M, 1)
        offd_sw = jnp.dot(perm, offd, preferred_element_type=jnp.float32)  # (M, 1)
        # det_row[bb*4 + n] == det(m1) for even n, det(m2) for odd n
        det_row = diag * diag_sw - offd * offd_sw                          # (M, 1)
        # each det appears twice per example -> scale by 0.5 * mult; the
        # wrapper sums the 4 rows of each example.
        ld_ref[...] = jnp.log(jnp.abs(det_row)) * half_logdet_mult

    return kernel


def _pick_batch_block(B, N):
    """Fill the MXU M rows (target bt*N in [128, 256]) while keeping >= 4 grid
    steps when the batch allows (v7x dual TensorCore, double-buffered)."""
    if B <= 8:
        return B                      # single step; block == full sublane extent
    target = 32 if B >= 128 else max(2, B // 4)
    bt = min(target, B)
    # bt must divide B and bt*N must be a multiple of 8 (sublane tiling).
    while bt > 1 and (B % bt or (bt * N) % 8):
        bt -= 1
    if B % bt or (bt * N) % 8:
        return B
    return bt


# ----------------------------------------------------------------------------
# Wrapper (glue: patching, weight pre-combination, un-patching)
# ----------------------------------------------------------------------------
def transformer_attn_forward(z, weights, params, logdet=0.0, permute=False,
                             batch_block=None):
    """z: [B, C, H, W] f32; weights: [6, C, C] (q1,q2,q3,k1,k2,k3, conv OI);
    params: [offset, offset2, offset3, scale] f32."""
    B, C, H, W = z.shape
    assert H == W and W % 2 == 0
    p = W // 2
    nps = W // p          # == 2
    N = nps * nps         # == 4
    P = p * p
    D = C * P
    assert N == 4, "patch grid is always 2x2 for p = W // 2"

    if batch_block is None:
        batch_block = _pick_batch_block(B, N)
    batch_block = int(max(1, min(batch_block, B)))
    while batch_block > 1 and (B % batch_block or (batch_block * N) % 8):
        batch_block -= 1
    if B % batch_block or ((batch_block * N) % 8 and batch_block != B):
        batch_block = B
    grid_b = B // batch_block
    M = batch_block * N                      # rows handled per grid step

    # --- patch extraction (glue), PyTorch "(c p1 p2)" ordering ---
    full_nd = z.reshape(B, C, nps, p, nps, p).transpose(
        0, 2, 4, 1, 3, 5).reshape(B * N, D)

    # Pre-tiled grid-invariant masks (avoid per-iteration broadcasts).
    mask_nd = _checkerboard((N, D))
    if permute:
        mask_nd = 1.0 - mask_nd
    mask_big = jnp.asarray(np.tile(mask_nd, (batch_block, 1)))        # (M, D)
    imask_big = 1.0 - mask_big

    eye_bt = np.eye(batch_block, dtype=np.float32)
    amask_big = jnp.asarray(np.kron(eye_bt, _checkerboard((N, N))))   # (M, M)
    eye_big = jnp.eye(M, dtype=jnp.float32)                           # (M, M)
    perm4 = np.zeros((N, N), dtype=np.float32)
    for n in range(N):
        perm4[n, (n + 2) % N] = 1.0
    perm_big = jnp.asarray(np.kron(eye_bt, perm4))                    # (M, M)

    # A = sum_h W_qh^T @ W_kh  (CxC), then lift to block-diagonal (DxD)
    hp = jax.lax.Precision.HIGHEST
    A = jnp.einsum('hoc,hod->cd', weights[0:3], weights[3:6], precision=hp)
    A_big = jnp.kron(A, jnp.eye(P, dtype=jnp.float32))                # (D, D)

    half_mult = 0.5 * float(p * (p // 2) * C)
    kernel = _make_attn_kernel(M, half_mult)

    out_nd, ld_col = pl.pallas_call(
        kernel,
        out_shape=(jax.ShapeDtypeStruct((B * N, D), jnp.float32),
                   jax.ShapeDtypeStruct((B * N, 1), jnp.float32)),
        grid=(grid_b,),
        in_specs=[
            pl.BlockSpec((M, D), lambda b: (b, 0)),      # x (flattened batch)
            pl.BlockSpec((D, D), lambda b: (0, 0)),      # A_big (resident)
            pl.BlockSpec((M, D), lambda b: (0, 0)),      # mask (pre-tiled)
            pl.BlockSpec((M, D), lambda b: (0, 0)),      # 1 - mask
            pl.BlockSpec((M, M), lambda b: (0, 0)),      # block-diag checkerboard
            pl.BlockSpec((M, M), lambda b: (0, 0)),      # identity
            pl.BlockSpec((M, M), lambda b: (0, 0)),      # block-diag swap perm
            pl.BlockSpec(memory_space=pltpu.SMEM),       # params scalars
        ],
        out_specs=(pl.BlockSpec((M, D), lambda b: (b, 0)),
                   pl.BlockSpec((M, 1), lambda b: (b, 0))),
        compiler_params=pltpu.CompilerParams(
            dimension_semantics=("parallel",),
            vmem_limit_bytes=32 * 1024 * 1024),
    )(full_nd, A_big, mask_big, imask_big, amask_big, eye_big, perm_big, params)

    # each example's 4 rows hold 0.5*mult*[log|d1|, log|d2|, log|d1|, log|d2|]
    ld = ld_col.reshape(B, N).sum(axis=-1)

    # --- un-patch back to NCHW (inverse of the patch extraction) ---
    z_out = out_nd.reshape(B, nps, nps, C, p, p).transpose(
        0, 3, 1, 4, 2, 5).reshape(B, C, H, W)
    return z_out, logdet + ld


# ----------------------------------------------------------------------------
# Pure-JAX reference (mirrors the PyTorch code, (c p1 p2) ordering)
# ----------------------------------------------------------------------------
def ref_forward(z, weights, params, logdet=0.0, permute=False):
    B, C, H, W = z.shape
    p = W // 2
    nps = W // p
    N = nps * nps
    P = p * p
    D = C * P
    offset, offset2, offset3, scale = (params[0], params[1], params[2], params[3])
    hp = jax.lax.Precision.HIGHEST

    full = z.reshape(B, C, nps, p, nps, p).transpose(0, 2, 4, 1, 3, 5).reshape(B, N, D)
    mask = jnp.asarray(_checkerboard((N, D)))
    if permute:
        mask = 1.0 - mask
    fm = (full * mask).reshape(B, N, C, P)

    def feat(Wm):
        return jnp.einsum('oc,bncp->bnop', Wm, fm, precision=hp).reshape(B, N, D)

    q1, q2, q3, k1, k2, k3 = (feat(weights[i]) for i in range(6))

    def qk(q, k):
        return jnp.einsum('bnd,bmd->bnm', q, k, precision=hp)

    amask = jnp.asarray(_checkerboard((N, N)))
    attn = (jax.nn.sigmoid((qk(q1, k1) + qk(q2, k2) + qk(q3, k3)) / scale + offset2)
            + offset3) * amask
    attn = attn + offset * jnp.eye(N, dtype=jnp.float32)

    m1 = attn[:, 0::2, 0::2]
    m2 = attn[:, 1::2, 1::2]
    mult = p * (p // 2) * C
    ld = (jnp.linalg.slogdet(m1)[1] + jnp.linalg.slogdet(m2)[1]) * mult

    out = jnp.einsum('bnm,bmd->bnd', attn, full * (1.0 - mask), precision=hp)
    out_final = out * (1.0 - mask) + full * mask
    z_out = out_final.reshape(B, nps, nps, C, p, p).transpose(
        0, 3, 1, 4, 2, 5).reshape(B, C, H, W)
    return z_out, logdet + ld


if __name__ == "__main__":
    key = jax.random.PRNGKey(0)
    B, C, H, W = 2, 4, 16, 16
    kz, kw = jax.random.split(key)

    z = jax.random.normal(kz, (B, C, H, W), dtype=jnp.float32)

    # kaiming_uniform_(a=sqrt(5)) on [C, C, 1, 1] -> Uniform(-1/sqrt(C), 1/sqrt(C))
    bound = 1.0 / math.sqrt(C)
    weights = jax.random.uniform(kw, (6, C, C), minval=-bound, maxval=bound,
                                 dtype=jnp.float32)
    # [offset, offset2, offset3, scale]
    params = jnp.array([0.99, 0.65, -0.6, 100.0], dtype=jnp.float32)

    z_out, ld = transformer_attn_forward(z, weights, params)
    (z_out, ld) = jax.block_until_ready((z_out, ld))

    z_ref, ld_ref = ref_forward(z, weights, params)
    assert jnp.allclose(z_out, z_ref, atol=1e-3, rtol=1e-3), "output mismatch"
    assert jnp.allclose(ld, ld_ref, atol=1e-3, rtol=1e-3), "logdet mismatch"

    print("KERNEL_OK")
</pallas_src>

<mosaic_0001>
module attributes {stable_mosaic.version = 11 : i64} {
  func.func @kernel(%arg0: i32, %arg1: memref<8x256xf32, #tpu.memory_space<vmem>>, %arg2: memref<256x256xf32, #tpu.memory_space<vmem>>, %arg3: memref<8x256xf32, #tpu.memory_space<vmem>>, %arg4: memref<8x256xf32, #tpu.memory_space<vmem>>, %arg5: memref<8x8xf32, #tpu.memory_space<vmem>>, %arg6: memref<8x8xf32, #tpu.memory_space<vmem>>, %arg7: memref<8x8xf32, #tpu.memory_space<vmem>>, %arg8: memref<4xf32, #tpu.memory_space<smem>>, %arg9: memref<8x256xf32, #tpu.memory_space<vmem>>, %arg10: memref<8x1xf32, #tpu.memory_space<vmem>>) attributes {dimension_semantics = [#tpu.dimension_semantics<parallel>], iteration_bounds = array<i64: 1>, scalar_prefetch = 0 : i64, scratch_operands = 0 : i64, tpu.core_type = #tpu.core_type<tc>, window_params = [{transform_indices = @transform_0, window_bounds = array<i64: 8, 256>}, {pipeline_mode = #tpu.pipeline_mode<synchronous>, transform_indices = @transform_1, window_bounds = array<i64: 256, 256>}, {pipeline_mode = #tpu.pipeline_mode<synchronous>, transform_indices = @transform_2, window_bounds = array<i64: 8, 256>}, {pipeline_mode = #tpu.pipeline_mode<synchronous>, transform_indices = @transform_3, window_bounds = array<i64: 8, 256>}, {pipeline_mode = #tpu.pipeline_mode<synchronous>, transform_indices = @transform_4, window_bounds = array<i64: 8, 8>}, {pipeline_mode = #tpu.pipeline_mode<synchronous>, transform_indices = @transform_5, window_bounds = array<i64: 8, 8>}, {pipeline_mode = #tpu.pipeline_mode<synchronous>, transform_indices = @transform_6, window_bounds = array<i64: 8, 8>}, {transform_indices = @transform_7, window_bounds = array<i64: 4>}, {transform_indices = @transform_8, window_bounds = array<i64: 8, 256>}, {transform_indices = @transform_9, window_bounds = array<i64: 8, 1>}]} {
    %c0 = arith.constant 0 : index
    %0 = memref.load %arg8[%c0] : memref<4xf32, #tpu.memory_space<smem>>
    %c1 = arith.constant 1 : index
    %1 = memref.load %arg8[%c1] : memref<4xf32, #tpu.memory_space<smem>>
    %c2 = arith.constant 2 : index
    %2 = memref.load %arg8[%c2] : memref<4xf32, #tpu.memory_space<smem>>
    %c3 = arith.constant 3 : index
    %3 = memref.load %arg8[%c3] : memref<4xf32, #tpu.memory_space<smem>>
    %cst = arith.constant 1.000000e+00 : f32
    %4 = arith.divf %cst, %3 : f32
    %c0_0 = arith.constant 0 : index
    %c0_1 = arith.constant 0 : index
    %5 = vector.load %arg3[%c0_0, %c0_1] : memref<8x256xf32, #tpu.memory_space<vmem>>, vector<8x256xf32>
    %c0_2 = arith.constant 0 : index
    %c0_3 = arith.constant 0 : index
    %6 = vector.load %arg4[%c0_2, %c0_3] : memref<8x256xf32, #tpu.memory_space<vmem>>, vector<8x256xf32>
    %c0_4 = arith.constant 0 : index
    %c0_5 = arith.constant 0 : index
    %7 = vector.load %arg5[%c0_4, %c0_5] : memref<8x8xf32, #tpu.memory_space<vmem>>, vector<8x8xf32>
    %c0_6 = arith.constant 0 : index
    %c0_7 = arith.constant 0 : index
    %8 = vector.load %arg6[%c0_6, %c0_7] : memref<8x8xf32, #tpu.memory_space<vmem>>, vector<8x8xf32>
    %c0_8 = arith.constant 0 : index
    %c0_9 = arith.constant 0 : index
    %9 = vector.load %arg7[%c0_8, %c0_9] : memref<8x8xf32, #tpu.memory_space<vmem>>, vector<8x8xf32>
    %c0_10 = arith.constant 0 : index
    %c0_11 = arith.constant 0 : index
    %10 = vector.load %arg2[%c0_10, %c0_11] : memref<256x256xf32, #tpu.memory_space<vmem>>, vector<256x256xf32>
    %c0_12 = arith.constant 0 : index
    %c0_13 = arith.constant 0 : index
    %11 = vector.load %arg1[%c0_12, %c0_13] : memref<8x256xf32, #tpu.memory_space<vmem>>, vector<8x256xf32>
    %12 = arith.mulf %11, %5 : vector<8x256xf32>
    %13 = arith.mulf %11, %6 : vector<8x256xf32>
    %cst_14 = arith.constant dense<0.000000e+00> : vector<8x256xf32>
    %14 = tpu.matmul %12, %10, %cst_14 {dimension_numbers = #tpu.dot_dimension_numbers<[1], [0], [0], [1], [0, 0, 1, 1], [], []>} : vector<8x256xf32>, vector<256x256xf32>, vector<8x256xf32> -> vector<8x256xf32>
    %cst_15 = arith.constant dense<0.000000e+00> : vector<8x8xf32>
    %15 = tpu.matmul %14, %12, %cst_15 {dimension_numbers = #tpu.dot_dimension_numbers<[1], [1], [0], [0], [0, 0, 1, 0], [], []>} : vector<8x256xf32>, vector<8x256xf32>, vector<8x8xf32> -> vector<8x8xf32>
    %16 = vector.broadcast %4 : f32 to vector<8x8xf32>
    %17 = arith.mulf %15, %16 : vector<8x8xf32>
    %18 = vector.broadcast %1 : f32 to vector<8x8xf32>
    %19 = arith.addf %17, %18 : vector<8x8xf32>
    %cst_16 = arith.constant 5.000000e-01 : f32
    %20 = vector.broadcast %cst_16 : f32 to vector<8x8xf32>
    %21 = arith.mulf %19, %20 : vector<8x8xf32>
    %22 = math.tanh %21 : vector<8x8xf32>
    %cst_17 = arith.constant 1.000000e+00 : f32
    %23 = vector.broadcast %cst_17 : f32 to vector<8x8xf32>
    %24 = arith.addf %22, %23 : vector<8x8xf32>
    %cst_18 = arith.constant 5.000000e-01 : f32
    %25 = vector.broadcast %cst_18 : f32 to vector<8x8xf32>
    %26 = arith.mulf %25, %24 : vector<8x8xf32>
    %27 = vector.broadcast %2 : f32 to vector<8x8xf32>
    %28 = arith.addf %26, %27 : vector<8x8xf32>
    %29 = arith.mulf %28, %7 : vector<8x8xf32>
    %30 = vector.broadcast %0 : f32 to vector<8x8xf32>
    %31 = arith.mulf %30, %8 : vector<8x8xf32>
    %32 = arith.addf %29, %31 : vector<8x8xf32>
    %cst_19 = arith.constant dense<0.000000e+00> : vector<8x256xf32>
    %33 = tpu.matmul %32, %13, %cst_19 {dimension_numbers = #tpu.dot_dimension_numbers<[1], [0], [0], [1], [0, 0, 1, 1], [], []>} : vector<8x8xf32>, vector<8x256xf32>, vector<8x256xf32> -> vector<8x256xf32>
    %34 = arith.mulf %33, %6 : vector<8x256xf32>
    %35 = arith.addf %34, %12 : vector<8x256xf32>
    %c0_20 = arith.constant 0 : index
    %c0_21 = arith.constant 0 : index
    %36 = vector.load %arg9[%c0_20, %c0_21] : memref<8x256xf32, #tpu.memory_space<vmem>>, vector<8x256xf32>
    tpu.vector_store %arg9[%c0_20, %c0_21], %35 {strides = array<i32>} : memref<8x256xf32, #tpu.memory_space<vmem>>, vector<8x256xf32>,
    %cst_22 = arith.constant dense<0.000000e+00> : vector<8xf32>
    %37 = vector.multi_reduction <add>, %32, %cst_22 [1] : vector<8x8xf32> to vector<8xf32>
    %38 = vector.shape_cast %37 : vector<8xf32> to vector<8x1xf32>
    %39 = arith.mulf %32, %8 : vector<8x8xf32>
    %cst_23 = arith.constant dense<0.000000e+00> : vector<8xf32>
    %40 = vector.multi_reduction <add>, %39, %cst_23 [1] : vector<8x8xf32> to vector<8xf32>
    %41 = vector.shape_cast %40 : vector<8xf32> to vector<8x1xf32>
    %42 = arith.subf %38, %41 : vector<8x1xf32>
    %cst_24 = arith.constant dense<0.000000e+00> : vector<8x1xf32>
    %43 = tpu.matmul %9, %41, %cst_24 {dimension_numbers = #tpu.dot_dimension_numbers<[1], [0], [0], [1], [0, 0, 1, 1], [], []>} : vector<8x8xf32>, vector<8x1xf32>, vector<8x1xf32> -> vector<8x1xf32>
    %cst_25 = arith.constant dense<0.000000e+00> : vector<8x1xf32>
    %44 = tpu.matmul %9, %42, %cst_25 {dimension_numbers = #tpu.dot_dimension_numbers<[1], [0], [0], [1], [0, 0, 1, 1], [], []>} : vector<8x8xf32>, vector<8x1xf32>, vector<8x1xf32> -> vector<8x1xf32>
    %45 = arith.mulf %41, %43 : vector<8x1xf32>
    %46 = arith.mulf %42, %44 : vector<8x1xf32>
    %47 = arith.subf %45, %46 : vector<8x1xf32>
    %48 = math.absf %47 : vector<8x1xf32>
    %49 = math.log %48 : vector<8x1xf32>
    %cst_26 = arith.constant 6.400000e+01 : f32
    %50 = vector.broadcast %cst_26 : f32 to vector<8x1xf32>
    %51 = arith.mulf %49, %50 : vector<8x1xf32>
    %c0_27 = arith.constant 0 : index
    %c0_28 = arith.constant 0 : index
    %52 = vector.load %arg10[%c0_27, %c0_28] : memref<8x1xf32, #tpu.memory_space<vmem>>, vector<8x1xf32>
    tpu.vector_store %arg10[%c0_27, %c0_28], %51 {strides = array<i32>} : memref<8x1xf32, #tpu.memory_space<vmem>>, vector<8x1xf32>,
    return
  }
  func.func @transform_0(%arg0: i32) -> (i32, i32) {
    %c0_i32 = arith.constant 0 : i32
    %c0_i32_0 = arith.constant 0 : i32
    return %arg0, %c0_i32 : i32, i32
  }
  func.func @transform_1(%arg0: i32) -> (i32, i32) {
    %c0_i32 = arith.constant 0 : i32
    %c0_i32_0 = arith.constant 0 : i32
    %c0_i32_1 = arith.constant 0 : i32
    return %c0_i32, %c0_i32_0 : i32, i32
  }
  func.func @transform_2(%arg0: i32) -> (i32, i32) {
    %c0_i32 = arith.constant 0 : i32
    %c0_i32_0 = arith.constant 0 : i32
    %c0_i32_1 = arith.constant 0 : i32
    return %c0_i32, %c0_i32_0 : i32, i32
  }
  func.func @transform_3(%arg0: i32) -> (i32, i32) {
    %c0_i32 = arith.constant 0 : i32
    %c0_i32_0 = arith.constant 0 : i32
    %c0_i32_1 = arith.constant 0 : i32
    return %c0_i32, %c0_i32_0 : i32, i32
  }
  func.func @transform_4(%arg0: i32) -> (i32, i32) {
    %c0_i32 = arith.constant 0 : i32
    %c0_i32_0 = arith.constant 0 : i32
    %c0_i32_1 = arith.constant 0 : i32
    return %c0_i32, %c0_i32_0 : i32, i32
  }
  func.func @transform_5(%arg0: i32) -> (i32, i32) {
    %c0_i32 = arith.constant 0 : i32
    %c0_i32_0 = arith.constant 0 : i32
    %c0_i32_1 = arith.constant 0 : i32
    return %c0_i32, %c0_i32_0 : i32, i32
  }
  func.func @transform_6(%arg0: i32) -> (i32, i32) {
    %c0_i32 = arith.constant 0 : i32
    %c0_i32_0 = arith.constant 0 : i32
    %c0_i32_1 = arith.constant 0 : i32
    return %c0_i32, %c0_i32_0 : i32, i32
  }
  func.func @transform_7(%arg0: i32) -> i32 {
    %c0_i32 = arith.constant 0 : i32
    %c0_i32_0 = arith.constant 0 : i32
    return %c0_i32 : i32
  }
  func.func @transform_8(%arg0: i32) -> (i32, i32) {
    %c0_i32 = arith.constant 0 : i32
    %c0_i32_0 = arith.constant 0 : i32
    return %arg0, %c0_i32 : i32, i32
  }
  func.func @transform_9(%arg0: i32) -> (i32, i32) {
    %c0_i32 = arith.constant 0 : i32
    %c0_i32_0 = arith.constant 0 : i32
    return %arg0, %c0_i32 : i32, i32
  }
}

</mosaic_0001>

<bundles_post_ra>
// kernel: tpu_custom_call.1
= control target key start
LH: loop header
LB: loop body
LE: loop exit
PB: predicated region body
PF: predicated region fallthrough
CT: control target
= control target key end

     0   :  { %15 = vsyncpa [#allocation3], 0  ;;  %s867_s0 = inlined_call_operand.hbm [shape: f32[8,256], index: 0, kind: input, shape index: {}]   ;;  %s868_s1 = inlined_call_operand.hbm [shape: f32[256,256], index: 1, kind: input, shape index: {}]   ;;  %s869_s2 = inlined_call_operand.hbm [shape: f32[8,256], index: 2, kind: input, shape index: {}]   ;;  %s870_s3 = inlined_call_operand.hbm [shape: f32[8,256], index: 3, kind: input, shape index: {}]   ;;  %s871_s4 = inlined_call_operand.hbm [shape: f32[8,8], index: 4, kind: input, shape index: {}]   ;;  %s872_s5 = inlined_call_operand.hbm [shape: f32[8,8], index: 5, kind: input, shape index: {}]   ;;  %s873_s6 = inlined_call_operand.hbm [shape: f32[8,8], index: 6, kind: input, shape index: {}]   ;;  %s874_s7 = inlined_call_operand.vmem [shape: f32[4], index: 7, kind: input, shape index: {}]   ;;  %s875_s8 = inlined_call_operand.hbm [shape: f32[8,256], index: 8, kind: output, shape index: {0}]   ;;  %s876_s9 = inlined_call_operand.vmem [shape: f32[8,1], index: 9, kind: output, shape index: {1}]  }
   0x1   :  { %16 = vsyncpa [#allocation7], 0 }
   0x2   :  { %17 = vsyncpa [#allocation10], 0 }
   0x3   :  { %18 = vsyncpa [#allocation13], 0 }
   0x4   :  { %19 = vsyncpa [#allocation5], 0  ;;  %s36_s11 = sshll.u32 %s868_s1, 4  ;;  %s37_s11 = int_to_ptr.hbm [resolvable:$true] %s36_s11 }
   0x5   :  { %20 = vsyncpa [#allocation4], 0  ;;  %s750_s12 = smov [#allocation6]   ;;  %s61_s16 = sshll.u32 %s870_s3, 4  ;;  %s62_s16 = int_to_ptr.hbm [resolvable:$true] %s61_s16 }
   0x6   :  { %s38_s13 = sshll.u32 %s750_s12, 4  ;;  %s751_s17 = smov 256   ;;  %s39_s13 = int_to_ptr.vmem [resolvable:$true] %s38_s13 }
   0x7   :  { %s752_s18 = smov 16   ;;  %s753_s19 = smov [#allocation9]  }
   0x8   :  { %44 = dma.hbm_to_vmem [thread:$0]  %s37_s11, 8192, %s39_s13, [#allocation7], %s751_s17, %s751_s17, %s752_s18  }
   0x9   :  { %s63_s20 = sshll.u32 %s753_s19, 4  ;;  %s83_s23 = sshll.u32 %s872_s5, 4  ;;  %s64_s20 = int_to_ptr.vmem [resolvable:$true] %s63_s20  ;;  %s84_s23 = int_to_ptr.hbm [resolvable:$true] %s83_s23 }
   0xa   :  { %66 = dma.hbm_to_vmem [thread:$0]  %s62_s16, 256, %s64_s20, [#allocation10]  }
   0xb   :  { %s26_s25 = sshll.u32 %s867_s0, 4  ;;  %s754_s26 = smov [#allocation12]   ;;  %s27_s25 = int_to_ptr.hbm [resolvable:$true] %s26_s25 }
   0xc   :  { %s85_s27 = sshll.u32 %s754_s26, 4  ;;  %s755_s3 = smov [#allocation2]   ;;  %s86_s27 = int_to_ptr.vmem [resolvable:$true] %s85_s27 }
   0xd   :  { %88 = dma.hbm_to_vmem [thread:$0]  %s84_s23, 128, %s86_s27, [#allocation13]  }
   0xe   :  { %s28_s28 = sshll.u32 %s755_s3, 4  ;;  %s50_s10 = sshll.u32 %s869_s2, 4  ;;  %s29_s28 = int_to_ptr.vmem [resolvable:$true] %s28_s28  ;;  %s51_s10 = int_to_ptr.hbm [resolvable:$true] %s50_s10 }
   0xf   :  { %31 = dma.hbm_to_vmem [thread:$0]  %s27_s25, 256, %s29_s28, [#allocation3]  }
  0x10   :  { %s72_s12 = sshll.u32 %s871_s4, 4  ;;  %s756_s13 = smov [#allocation8]   ;;  %s73_s12 = int_to_ptr.hbm [resolvable:$true] %s72_s12 }
  0x11   :  { %s52_s0 = sshll.u32 %s756_s13, 4  ;;  %s757_s14 = smov [#allocation11]   ;;  %s53_s0 = int_to_ptr.vmem [resolvable:$true] %s52_s0 }
  0x12   :  { %55 = dma.hbm_to_vmem [thread:$0]  %s51_s10, 256, %s53_s0, [#allocation7]  }
  0x13   :  { %s74_s15 = sshll.u32 %s757_s14, 4  ;;  %s94_s18 = sshll.u32 %s873_s6, 4  ;;  %s75_s15 = int_to_ptr.vmem [resolvable:$true] %s74_s15  ;;  %s95_s18 = int_to_ptr.hbm [resolvable:$true] %s94_s18 }
  0x14   :  { %77 = dma.hbm_to_vmem [thread:$0]  %s73_s12, 128, %s75_s15, [#allocation10]  }
  0x15   :  { %s105_s20 = sshll.u32 %s874_s7, 4  ;;  %s758_s21 = smov [#allocation14]   ;;  %s106_s20 = int_to_ptr.vmem [resolvable:$true] %s105_s20 }
  0x16   :  { %s96_s4 = sshll.u32 %s758_s21, 4  ;;  %s759_s22 = smov [#allocation15]   ;;  %s97_s4 = int_to_ptr.vmem [resolvable:$true] %s96_s4 }
  0x17   :  { %99 = dma.hbm_to_vmem [thread:$0]  %s95_s18, 128, %s97_s4, [#allocation13]  }
  0x18   :  { %108 = dma.vmem_to_smem %s106_s20, 16, %s759_s22, [#allocation5]  }
  0x19   :  { %738 = dma.done.wait [#allocation3], 256  }
  0x1a   :  { %739 = vsyncadd [#allocation3], 4294967040 }
  0x1b   :  { %740 = dma.done.wait [#allocation7], 8448  }
  0x1c   :  { %741 = vsyncadd [#allocation7], 4294958848 }
  0x1d   :  { %742 = dma.done.wait [#allocation10], 384  }
  0x1e   :  { %743 = vsyncadd [#allocation10], 4294966912 }
  0x1f   :  { %744 = dma.done.wait [#allocation13], 256  }
  0x20   :  { %745 = vsyncadd [#allocation13], 4294967040 }
  0x21   :  { %746 = dma.done.wait [#allocation5], 16  }
  0x22   :  { %747 = vsyncadd [#allocation5], 4294967280 }
  0x23   :  { %141 = sfence }
  0x24   :  { %v200_v0 = vld [vmem:[#allocation6 + $0xf8] sm:$0xff]  ;;  %v198_v2 = vld [vmem:[#allocation6 + $0xe8] sm:$0xff]  ;;  %v199_v6 = vld [vmem:[#allocation6 + $0xf0] sm:$0xff]  ;;  %s510_s6 = sld [smem:[#allocation15 + $0x3]]  ;;  %vm373_vm4 = vcmask 64512   ;;  %s760_s25 = smov [#allocation16]  }
  0x25   :  { %v232_v1 = vld [vmem:[#allocation6 + $0x1f8] sm:$0xff]  ;;  %279 = vmatpush.msra.mxu2 %v200_v0  ;;  %v230_v3 = vld [vmem:[#allocation6 + $0x1e8] sm:$0xff]  ;;  %v231_v7 = vld [vmem:[#allocation6 + $0x1f0] sm:$0xff]  ;;  %239 = vmatpush.msra.mxu0 %v199_v6  ;;  %s508_s7 = sld [smem:[#allocation15 + $0x1]]  ;;  %s488_s26 = sshll.u32 %s760_s25, 4  ;;  %vm481_vm5 = vcmask 7168   ;;  %s489_s26 = int_to_ptr.vmem [resolvable:$true] %s488_s26 }
  0x26   :  { %299 = vmatpush.msra.mxu3 %v232_v1  ;;  %v196_v4 = vld [vmem:[#allocation6 + $0xd8] sm:$0xff]  ;;  %v197_v8 = vld [vmem:[#allocation6 + $0xe0] sm:$0xff]  ;;  %259 = vmatpush.msra.mxu1 %v231_v7  ;;  %v194_v10 = vld [vmem:[#allocation6 + $0xc8] sm:$0xff]  ;;  %s509_s1 = sld [smem:[#allocation15 + $0x2]]  ;;  %s490_s28 = sshll.u32 %s875_s8, 4  ;;  %s491_s28 = int_to_ptr.hbm [resolvable:$true] %s490_s28 }
  0x27   :  { %v228_v5 = vld [vmem:[#allocation6 + $0x1d8] sm:$0xff]  ;;  %280 = vmatpush.msra.mxu2 %v198_v2  ;;  %v229_v9 = vld [vmem:[#allocation6 + $0x1e0] sm:$0xff]  ;;  %v226_v11 = vld [vmem:[#allocation6 + $0x1c8] sm:$0xff]  ;;  %240 = vmatpush.msra.mxu0 %v197_v8  ;;  %s142_s24 = sld [smem:[#allocation15]] }
  0x28   :  { %300 = vmatpush.msra.mxu3 %v230_v3  ;;  %v195_v12 = vld [vmem:[#allocation6 + $0xd0] sm:$0xff]  ;;  %260 = vmatpush.msra.mxu1 %v229_v9  ;;  %v192_v14 = vld [vmem:[#allocation6 + $0xb8] sm:$0xff]  ;;  %v193_v16 = vld [vmem:[#allocation6 + $0xc0] sm:$0xff] }
  0x29   :  { %281 = vmatpush.msra.mxu2 %v196_v4  ;;  %v227_v13 = vld [vmem:[#allocation6 + $0x1d0] sm:$0xff]  ;;  %v224_v15 = vld [vmem:[#allocation6 + $0x1b8] sm:$0xff]  ;;  %v225_v17 = vld [vmem:[#allocation6 + $0x1c0] sm:$0xff]  ;;  %241 = vmatpush.msra.mxu0 %v195_v12 }
  0x2a   :  { %301 = vmatpush.msra.mxu3 %v228_v5  ;;  %261 = vmatpush.msra.mxu1 %v227_v13  ;;  %v190_v18 = vld [vmem:[#allocation6 + $0xa8] sm:$0xff]  ;;  %v191_v20 = vld [vmem:[#allocation6 + $0xb0] sm:$0xff]  ;;  %v188_v22 = vld [vmem:[#allocation6 + $0x98] sm:$0xff]  ;;  %v146_v6 = vstv %s510_s6 }
  0x2b   :  { %282 = vmatpush.msra.mxu2 %v194_v10  ;;  %v222_v19 = vld [vmem:[#allocation6 + $0x1a8] sm:$0xff]  ;;  %v223_v21 = vld [vmem:[#allocation6 + $0x1b0] sm:$0xff]  ;;  %242 = vmatpush.msra.mxu0 %v193_v16  ;;  %v220_v23 = vld [vmem:[#allocation6 + $0x198] sm:$0xff]  ;;  %528 = vrcp.f32 %v146_v6  ;;  %v158_v9 = vand.u32 2147483648, %v146_v6  ;;  %vm152_vm0 = vweird.f32 %v146_v6 }
  0x2c   :  { %302 = vmatpush.msra.mxu3 %v226_v11  ;;  %262 = vmatpush.msra.mxu1 %v225_v17  ;;  %v189_v24 = vld [vmem:[#allocation6 + $0xa0] sm:$0xff]  ;;  %v186_v26 = vld [vmem:[#allocation6 + $0x88] sm:$0xff]  ;;  %v187_v28 = vld [vmem:[#allocation6 + $0x90] sm:$0xff]  ;;  %v156_v11 = vand.u32 2147483647, %v146_v6 }
  0x2d   :  { %283 = vmatpush.msra.mxu2 %v192_v14  ;;  %v221_v25 = vld [vmem:[#allocation6 + $0x1a0] sm:$0xff]  ;;  %243 = vmatpush.msra.mxu0 %v191_v20  ;;  %v218_v27 = vld [vmem:[#allocation6 + $0x188] sm:$0xff]  ;;  %v219_v29 = vld [vmem:[#allocation6 + $0x190] sm:$0xff]  ;;  %v159_v13 = vor.u32 1.1754944e-38, %v158_v9 }
  0x2e   :  { %303 = vmatpush.msra.mxu3 %v224_v15  ;;  %263 = vmatpush.msra.mxu1 %v223_v21  ;;  %v184_v30 = vld [vmem:[#allocation6 + $0x78] sm:$0xff]  ;;  %v185_v32 = vld [vmem:[#allocation6 + $0x80] sm:$0xff]  ;;  %v182_v34 = vld [vmem:[#allocation6 + $0x68] sm:$0xff]  ;;  %vm157_vm3 = vcmp.eq.f32.partialorder %v156_v11, 8.507059e+37 }
  0x2f   :  { %284 = vmatpush.msra.mxu2 %v190_v18  ;;  %244 = vmatpush.msra.mxu0 %v189_v24  ;;  %v216_v31 = vld [vmem:[#allocation6 + $0x178] sm:$0xff]  ;;  %v217_v33 = vld [vmem:[#allocation6 + $0x180] sm:$0xff]  ;;  %v214_v35 = vld [vmem:[#allocation6 + $0x168] sm:$0xff] }
  0x30   :  { %304 = vmatpush.msra.mxu3 %v222_v19  ;;  %264 = vmatpush.msra.mxu1 %v221_v25  ;;  %v183_v36 = vld [vmem:[#allocation6 + $0x70] sm:$0xff]  ;;  %v180_v38 = vld [vmem:[#allocation6 + $0x58] sm:$0xff]  ;;  %v181_v40 = vld [vmem:[#allocation6 + $0x60] sm:$0xff] }
  0x31   :  { %285 = vmatpush.msra.mxu2 %v188_v22  ;;  %245 = vmatpush.msra.mxu0 %v187_v28  ;;  %v215_v37 = vld [vmem:[#allocation6 + $0x170] sm:$0xff]  ;;  %v212_v39 = vld [vmem:[#allocation6 + $0x158] sm:$0xff]  ;;  %v213_v41 = vld [vmem:[#allocation6 + $0x160] sm:$0xff]  ;;  %v529_v7 = vpop.eup %528 }
  0x32   :  { %305 = vmatpush.msra.mxu3 %v220_v23  ;;  %265 = vmatpush.msra.mxu1 %v219_v29  ;;  %v178_v42 = vld [vmem:[#allocation6 + $0x48] sm:$0xff]  ;;  %v179_v44 = vld [vmem:[#allocation6 + $0x50] sm:$0xff]  ;;  %v176_v46 = vld [vmem:[#allocation6 + $0x38] sm:$0xff]  ;;  %v148_v8 = vmul.f32 %v529_v7, %v146_v6  ;;  %vm153_vm1 = vweird.f32 %v529_v7 }
  0x33   :  { %286 = vmatpush.msra.mxu2 %v186_v26  ;;  %246 = vmatpush.msra.mxu0 %v185_v32  ;;  %v210_v43 = vld [vmem:[#allocation6 + $0x148] sm:$0xff]  ;;  %v211_v45 = vld [vmem:[#allocation6 + $0x150] sm:$0xff]  ;;  %v208_v47 = vld [vmem:[#allocation6 + $0x138] sm:$0xff] }
  0x34   :  { %306 = vmatpush.msra.mxu3 %v218_v27  ;;  %266 = vmatpush.msra.mxu1 %v217_v33  ;;  %v174_v48 = vld [vmem:[#allocation6 + $0x28] sm:$0xff]  ;;  %v177_v50 = vld [vmem:[#allocation6 + $0x40] sm:$0xff]  ;;  %v175_v52 = vld [vmem:[#allocation6 + $0x30] sm:$0xff]  ;;  %v149_v10 = vsub.f32 1.0, %v148_v8 }
  0x35   :  { %287 = vmatpush.msra.mxu2 %v184_v30  ;;  %247 = vmatpush.msra.mxu0 %v183_v36  ;;  %v206_v49 = vld [vmem:[#allocation6 + $0x128] sm:$0xff]  ;;  %v209_v51 = vld [vmem:[#allocation6 + $0x140] sm:$0xff]  ;;  %v207_v53 = vld [vmem:[#allocation6 + $0x130] sm:$0xff] }
  0x36   :  { %307 = vmatpush.msra.mxu3 %v216_v31  ;;  %267 = vmatpush.msra.mxu1 %v215_v37  ;;  %v162_v54 = vld [vmem:[#allocation8] sm:$0xff]  ;;  %v835_v55 = vld [vmem:[#allocation2] sm:$0xff]  ;;  %v163_v56 = vld [vmem:[#allocation8 + $0x8] sm:$0xff]  ;;  %v150_v12 = vmul.f32 %v529_v7, %v149_v10  ;;  %v361_v31 = vstv %s508_s7  ;;  %v367_v37 = vstv %s509_s1 }
  0x37   :  { %288 = vmatpush.msra.mxu2 %v182_v34  ;;  %248 = vmatpush.msra.mxu0 %v181_v40  ;;  %v837_v57 = vld [vmem:[#allocation2 + $0x8] sm:$0xff]  ;;  %v173_v60 = vld [vmem:[#allocation6 + $0x20] sm:$0xff]  ;;  %v170_v62 = vld [vmem:[#allocation6 + $0x8] sm:$0xff]  ;;  %v840_v0 = vmul.f32 %v835_v55, %v162_v54 }
  0x38   :  { %308 = vmatpush.msra.mxu3 %v214_v35  ;;  %268 = vmatpush.msra.mxu1 %v213_v41  ;;  %v172_v58 = vld [vmem:[#allocation6 + $0x18] sm:$0xff]  ;;  %v205_v61 = vld [vmem:[#allocation6 + $0x120] sm:$0xff]  ;;  %v202_v63 = vld [vmem:[#allocation6 + $0x108] sm:$0xff]  ;;  %v843_v1 = vmul.f32 %v837_v57, %v163_v56  ;;  %v151_v14 = vadd.f32 %v529_v7, %v150_v12 }
  0x39   :  { %289 = vmatpush.msra.mxu2 %v180_v38  ;;  %249 = vmatpush.msra.mxu0 %v179_v44  ;;  %v204_v59 = vld [vmem:[#allocation6 + $0x118] sm:$0xff]  ;;  %v171_v2 = vld [vmem:[#allocation6 + $0x10] sm:$0xff]  ;;  %v169_v4 = vld [vmem:[#allocation6] sm:$0xff] }
  0x3a   :  { %309 = vmatpush.msra.mxu3 %v212_v39  ;;  %269 = vmatpush.msra.mxu1 %v211_v45  ;;  %v203_v3 = vld [vmem:[#allocation6 + $0x110] sm:$0xff]  ;;  %v201_v5 = vld [vmem:[#allocation6 + $0x100] sm:$0xff]  ;;  %vm154_vm2 = vmor %vm152_vm0, %vm153_vm1  ;;  %v370_v39 = vstv %s142_s24 }
  0x3b   :  { %290 = vmatpush.msra.mxu2 %v178_v42  ;;  %250 = vmatpush.msra.mxu0 %v177_v50  ;;  %v155_v15 = vsel %vm154_vm2, %v529_v7, %v151_v14  ;;  %v164_v23 = vld [vmem:[#allocation9] sm:$0xff]  ;;  %v165_v24 = vld [vmem:[#allocation9 + $0x8] sm:$0xff]  ;;  %v167_v38 = vld [vmem:[#allocation12] sm:$0xff] }
  0x3c   :  { %310 = vmatpush.msra.mxu3 %v210_v43  ;;  %270 = vmatpush.msra.mxu1 %v209_v51  ;;  %v160_v16 = vsel %vm157_vm3, %v159_v13, %v155_v15  ;;  %v237_v25 = vmul.f32 %v835_v55, %v164_v23  ;;  %v238_v26 = vmul.f32 %v837_v57, %v165_v24  ;;  %v166_v41 = vld [vmem:[#allocation11] sm:$0xff]  ;;  %v168_v50 = vld [vmem:[#allocation14] sm:$0xff] }
  0x3d   :  { %291 = vmatpush.msra.mxu2 %v176_v46  ;;  %251 = vmatpush.msra.mxu0 %v175_v52  ;;  %515 = vpush %v160_v16  ;;  %v371_v43 = vmul.f32 %v370_v39, %v167_v38 }
  0x3e   :  { %311 = vmatpush.msra.mxu3 %v208_v47  ;;  %271 = vmatpush.msra.mxu1 %v207_v53 }
  0x3f   :  { %292 = vmatpush.msra.mxu2 %v174_v48  ;;  %252 = vmatpush.msra.mxu0 %v173_v60 }
  0x40   :  { %312 = vmatpush.msra.mxu3 %v206_v49  ;;  %272 = vmatpush.msra.mxu1 %v205_v61 }
  0x41   :  { %293 = vmatpush.msra.mxu2 %v172_v58  ;;  %253 = vmatpush.msra.mxu0 %v171_v2 }
  0x42   :  { %313 = vmatpush.msra.mxu3 %v204_v59  ;;  %273 = vmatpush.msra.mxu1 %v203_v3 }
  0x43   :  { %294 = vmatpush.msra.mxu2 %v170_v62  ;;  %254 = vmatpush.msra.mxu0 %v169_v4 }
  0x44   :  { %314 = vmatpush.msra.mxu3 %v202_v63  ;;  %295 = vmatmul.f32.vlgmr.msra.gmra.mxu2 %v840_v0 }
  0x45   :  { %315 = vmatmul.f32.vlgmr.msra.gmra.mxu3 %v843_v1  ;;  %274 = vmatpush.msra.mxu1 %v201_v5 }
  0x46   :  { %255 = vmatmul.f32.vlgmr.msra.gmra.mxu0 %v840_v0  ;;  %275 = vmatmul.f32.vlgmr.msra.gmra.mxu1 %v843_v1 }
  0x47   :  { %334 = vmatpush.xpose.msrb.mxu0 %v840_v0  ;;  %354 = vmatpush.xpose.msrb.mxu1 %v843_v1 }
  0x48   :  { %392 = vmatpush.msrb.mxu2 %v237_v25  ;;  %412 = vmatpush.msrb.mxu3 %v238_v26 }
  0x6e   :  { %s516_s23 = spop %515 }
  0x6f   :  { %v359_v29 = vstv %s516_s23 }
  0xc3   :  { %v256_v17 = vpop.f32.mrf.mxu0  ;;  %v276_v18 = vpop.f32.mrf.mxu1 }
  0xc4   :  { %v277_v19 = vadd.f32 %v276_v18, %v256_v17 }
  0xc6   :  { %335 = vmatmul.f32.vlgmr.msrb.gmra.mxu0 %v277_v19 }
  0xc7   :  { %v296_v20 = vpop.f32.mrf.mxu2 }
  0xc8   :  { %v316_v21 = vpop.f32.mrf.mxu3 }
  0xc9   :  { %v317_v22 = vadd.f32 %v316_v21, %v296_v20 }
  0xcb   :  { %355 = vmatmul.f32.vlgmr.msrb.gmra.mxu1 %v317_v22 }
 0x143   :  { %v336_v27 = vpop.f32.mrf.mxu0 }
 0x148   :  { %v356_v28 = vpop.f32.mrf.mxu1 }
 0x149   :  { %v357_v30 = vadd.f32 %v356_v28, %v336_v27 }
 0x14b   :  { %v360_v32 = vmul.f32 %v359_v29, %v357_v30 }
 0x14d   :  { %v362_v33 = vadd.f32 %v361_v31, %v360_v32 }
 0x14f   :  { %v363_v34 = vmul.f32 0.5, %v362_v33 }
 0x151   :  { %530 = vtanh.f32 %v363_v34 }
 0x157   :  { %v531_v35 = vpop.eup %530 }
 0x158   :  { %v365_v36 = vadd.f32 1.0, %v531_v35 }
 0x15a   :  { %v366_v40 = vmul.f32 0.5, %v365_v36 }
 0x15c   :  { %v368_v42 = vadd.f32 %v367_v37, %v366_v40 }
 0x15e   :  { %v369_v44 = vmul.f32 %v368_v42, %v166_v41 }
 0x160   :  { %v372_v45 = vadd.f32 %v371_v43, %v369_v44 }
 0x162   :  { %511 = vmatmul.msk.f32.vlgmr.msrb.gmra.mxu2 %vm373_vm4, %v372_v45  ;;  %512 = vmatmul.msk.f32.vlgmr.msrb.gmra.mxu3 %vm373_vm4, %v372_v45  ;;  %v423_v46 = vsel %vm373_vm4, %v372_v45, 0.0  ;;  %v426_v47 = vmul.f32 %v372_v45, %v167_v38 }
 0x163   :  { %424 = vadd.xlane.f32.xlu0 %v423_v46 }
 0x164   :  { %v427_v48 = vsel %vm373_vm4, %v426_v47, 0.0 }
 0x16b   :  { %428 = vadd.xlane.f32.xlu0 %v427_v48 }
 0x1d6   :  { %v425_v49 = vpop.xlane.xlu0 %424 }
 0x1de   :  { %v429_v51 = vpop.xlane.xlu0 %428 }
 0x1df   :  { %v430_v52 = vsub.f32 %v425_v49, %v429_v51  ;;  %449 = vmatpush.msra.mxu0 %v429_v51 }
 0x1e0   :  { %513 = vmatmul.msk.f32.vlgmr.msra.gmra.mxu0 %vm373_vm4, %v168_v50 }
 0x1e1   :  { %469 = vmatpush.msra.mxu1 %v430_v52 }
 0x1e2   :  { %514 = vmatmul.msk.f32.vlgmr.msra.gmra.mxu1 %vm373_vm4, %v168_v50 }
 0x1e5   :  { %v394_v53 = vpop.f32.mrf.mxu2  ;;  %v414_v54 = vpop.f32.mrf.mxu3 }
 0x1e6   :  { %v417_v55 = vmul.f32 %v394_v53, %v164_v23  ;;  %v418_v56 = vmul.f32 %v414_v54, %v165_v24 }
 0x1e8   :  { %v419_v57 = vadd.f32 %v417_v55, %v840_v0  ;;  %v420_v58 = vadd.f32 %v418_v56, %v843_v1 }
 0x1ea   :  { %421 = vst [vmem:[#allocation16] sm:$0xff] %v419_v57 }
 0x1eb   :  { %422 = vst [vmem:[#allocation16 + $0x8] sm:$0xff] %v420_v58 }
 0x1ec   :  { %493 = dma.vmem_to_hbm [thread:$0]  %s489_s26, 256, %s491_s28, [#allocation4]  }
 0x25d   :  { %v451_v59 = vpop.f32.mrf.mxu0 }
 0x25e   :  { %v474_v61 = vmul.f32 %v451_v59, %v429_v51 }
 0x25f   :  { %v471_v60 = vpop.f32.mrf.mxu1 }
 0x260   :  { %v475_v62 = vmul.f32 %v471_v60, %v430_v52 }
 0x262   :  { %v476_v63 = vsub.f32 %v474_v61, %v475_v62 }
 0x264   :  { %v477_v2 = vand.u32 2147483647, %v476_v63 }
 0x266   :  { %532 = vlog2.f32 %v477_v2 }
 0x26c   :  { %v533_v0 = vpop.eup %532 }
 0x26d   :  { %v479_v1 = vmul.f32 0.6931472, %v533_v0 }
 0x26f   :  { %v480_v3 = vmul.f32 64.0, %v479_v1 }
 0x271   :  { %482 = vst.msk [vmem:[%s876_s9] sm:$0xff] %vm481_vm5, %v480_v3 }
 0x272   :  { %748 = dma.done.wait [#allocation4], 256  }
 0x273   :  { %749 = vsyncadd [#allocation4], 4294967040 }
 0x274   :  { %502 = vsyncpa [#allocation3], 1 }
 0x275   :  { %503 = vsyncpa [#allocation7], 1 }
 0x276   :  { %504 = vsyncpa [#allocation10], 1 }
 0x277   :  { %505 = vsyncpa [#allocation13], 1 }
 0x278   :  { %506 = vsyncpa [#allocation4], 1 }
 0x279   :  { %507 = vsyncpa [#allocation5], 1 }

</bundles_post_ra>
